<compile_context>
chip_gen: v7x
topology: tpu7x:2x2x1
jax: 0.10.0
libtpu: 0.0.40
codegen_flags: <defaults>
</compile_context>

<pallas_src>
import functools

import jax
import jax.numpy as jnp
from jax import lax
from jax.experimental import pallas as pl
from jax.experimental.pallas import tpu as pltpu

DIGITIZE_NUM = 20
RANGE = (-1.0, 1.0)


def _ce_kernel(x_ref, y_ref, loss_ref, *, num_classes, lo, hi):
    # x_ref: (TILE_N, C) logits in native dtype; y_ref: (TILE_N, 1) continuous targets.
    x = x_ref[...].astype(jnp.float32)
    y = y_ref[...].astype(jnp.float32)
    tn, c = x.shape

    # Arithmetic digitize: bin = clip(floor((y - lo) * C / (hi - lo)), 0, C-1).
    # Matches np.digitize(y, linspace(lo, hi, C+1)) - 1 (with the module's top-bin
    # clamp), and additionally clamps y < lo to bin 0.
    scale = jnp.float32(float(num_classes) / (float(hi) - float(lo)))
    y_bin = jnp.floor((y - jnp.float32(lo)) * scale)
    y_bin = jnp.clip(y_bin, 0.0, jnp.float32(num_classes - 1)).astype(jnp.int32)  # (TILE_N, 1)

    # Gather the target logit via a one-hot mask (no per-row integer gather on TPU).
    col = lax.broadcasted_iota(jnp.int32, (tn, c), 1)                # (TILE_N, C)
    onehot = (col == y_bin).astype(jnp.float32)
    picked = jnp.sum(x * onehot, axis=1, keepdims=True)              # (TILE_N, 1)

    # Numerically stable log-sum-exp per row.
    m = jnp.max(x, axis=1, keepdims=True)
    lse = m + jnp.log(jnp.sum(jnp.exp(x - m), axis=1, keepdims=True))

    loss_ref[...] = lse - picked                                     # (TILE_N, 1)


def custom_cross_entropy_loss(x, y, digitize_num=DIGITIZE_NUM, value_range=RANGE,
                              tile_n=512):
    assert digitize_num != 1
    n, c = x.shape
    assert c == digitize_num
    y_flat = y.reshape(-1, 1)                       # y.view(-1) -> (N, 1)
    assert y_flat.shape[0] == n

    # Tile size: multiple of 8 sublanes, no larger than the (rounded-up) row count.
    tile_n = max(8, (int(tile_n) // 8) * 8)
    tile_n = min(tile_n, ((n + 7) // 8) * 8)
    num_tiles = pl.cdiv(n, tile_n)
    n_pad = num_tiles * tile_n

    if n_pad != n:
        x = jnp.pad(x, ((0, n_pad - n), (0, 0)))
        y_flat = jnp.pad(y_flat, ((0, n_pad - n), (0, 0)))

    kernel = functools.partial(
        _ce_kernel,
        num_classes=digitize_num,
        lo=float(value_range[0]),
        hi=float(value_range[1]),
    )

    per_row = pl.pallas_call(
        kernel,
        out_shape=jax.ShapeDtypeStruct((n_pad, 1), jnp.float32),
        grid=(num_tiles,),
        in_specs=[
            pl.BlockSpec((tile_n, c), lambda i: (i, 0)),   # x rows (native dtype DMA)
            pl.BlockSpec((tile_n, 1), lambda i: (i, 0)),   # y rows
        ],
        out_specs=pl.BlockSpec((tile_n, 1), lambda i: (i, 0)),
        compiler_params=pltpu.CompilerParams(
            dimension_semantics=("parallel",),
            vmem_limit_bytes=32 * 1024 * 1024,
        ),
    )(x, y_flat)

    # Final mean over the true N rows (drops tail padding), reduction = "mean".
    return jnp.mean(per_row[:n, 0])


if __name__ == "__main__":
    key = jax.random.PRNGKey(0)
    k1, k2 = jax.random.split(key)

    N = 40
    # logits over the 20 digitized bins (keep native dtype; no wrapper up-cast)
    x = jax.random.normal(k1, (N, DIGITIZE_NUM), dtype=jnp.float32)
    # continuous regression targets in [-1, 1]
    y = jax.random.uniform(k2, (N,), minval=-1.0, maxval=1.0, dtype=jnp.float32)

    # small tile to exercise the multi-tile grid and tail-padding path
    loss = custom_cross_entropy_loss(x, y, tile_n=16)
    jax.block_until_ready(loss)

    # plain-JAX reference (same semantics as the PyTorch module)
    edges = jnp.linspace(RANGE[0], RANGE[1], DIGITIZE_NUM + 1)
    y_dig = jnp.searchsorted(edges, y, side="right") - 1
    y_dig = jnp.clip(y_dig, 0, DIGITIZE_NUM - 1)
    logp = jax.nn.log_softmax(x.astype(jnp.float32), axis=-1)
    ref = -jnp.mean(jnp.take_along_axis(logp, y_dig[:, None], axis=1))
    assert jnp.allclose(loss, ref, atol=1e-5), (loss, ref)

    print("KERNEL_OK")
</pallas_src>

<mosaic_0001>
module attributes {stable_mosaic.version = 11 : i64} {
  func.func @_ce_kernel(%arg0: i32, %arg1: memref<16x20xf32, #tpu.memory_space<vmem>>, %arg2: memref<16x1xf32, #tpu.memory_space<vmem>>, %arg3: memref<16x1xf32, #tpu.memory_space<vmem>>) attributes {dimension_semantics = [#tpu.dimension_semantics<parallel>], iteration_bounds = array<i64: 3>, scalar_prefetch = 0 : i64, scratch_operands = 0 : i64, tpu.core_type = #tpu.core_type<tc>, window_params = [{transform_indices = @transform_0, window_bounds = array<i64: 16, 20>}, {transform_indices = @transform_1, window_bounds = array<i64: 16, 1>}, {transform_indices = @transform_2, window_bounds = array<i64: 16, 1>}]} {
    %c0 = arith.constant 0 : index
    %c0_0 = arith.constant 0 : index
    %0 = vector.load %arg1[%c0, %c0_0] : memref<16x20xf32, #tpu.memory_space<vmem>>, vector<16x20xf32>
    %c0_1 = arith.constant 0 : index
    %c0_2 = arith.constant 0 : index
    %1 = vector.load %arg2[%c0_1, %c0_2] : memref<16x1xf32, #tpu.memory_space<vmem>>, vector<16x1xf32>
    %cst = arith.constant -1.000000e+00 : f32
    %2 = vector.broadcast %cst : f32 to vector<16x1xf32>
    %3 = arith.subf %1, %2 : vector<16x1xf32>
    %cst_3 = arith.constant 1.000000e+01 : f32
    %4 = vector.broadcast %cst_3 : f32 to vector<16x1xf32>
    %5 = arith.mulf %3, %4 : vector<16x1xf32>
    %6 = math.floor %5 : vector<16x1xf32>
    %cst_4 = arith.constant 0.000000e+00 : f32
    %cst_5 = arith.constant 1.900000e+01 : f32
    %7 = vector.broadcast %cst_4 : f32 to vector<16x1xf32>
    %8 = arith.maximumf %7, %6 : vector<16x1xf32>
    %9 = vector.broadcast %cst_5 : f32 to vector<16x1xf32>
    %10 = arith.minimumf %9, %8 : vector<16x1xf32>
    %11 = arith.fptosi %10 : vector<16x1xf32> to vector<16x1xi32>
    %12 = tpu.iota {dimensions = array<i32: 1>} : vector<16x20xi32>
    %13 = vector.broadcast %11 : vector<16x1xi32> to vector<16x20xi32>
    %14 = arith.cmpi eq, %12, %13 : vector<16x20xi32>
    %15 = arith.extui %14 : vector<16x20xi1> to vector<16x20xi32>
    %16 = arith.sitofp %15 : vector<16x20xi32> to vector<16x20xf32>
    %17 = arith.mulf %0, %16 : vector<16x20xf32>
    %cst_6 = arith.constant dense<0.000000e+00> : vector<16xf32>
    %18 = vector.multi_reduction <add>, %17, %cst_6 [1] : vector<16x20xf32> to vector<16xf32>
    %19 = vector.shape_cast %18 : vector<16xf32> to vector<16x1xf32>
    %cst_7 = arith.constant dense<0xFF800000> : vector<16xf32>
    %20 = vector.multi_reduction <maximumf>, %0, %cst_7 [1] : vector<16x20xf32> to vector<16xf32>
    %21 = vector.shape_cast %20 : vector<16xf32> to vector<16x1xf32>
    %22 = vector.broadcast %21 : vector<16x1xf32> to vector<16x20xf32>
    %23 = arith.subf %0, %22 : vector<16x20xf32>
    %24 = math.exp %23 : vector<16x20xf32>
    %cst_8 = arith.constant dense<0.000000e+00> : vector<16xf32>
    %25 = vector.multi_reduction <add>, %24, %cst_8 [1] : vector<16x20xf32> to vector<16xf32>
    %26 = vector.shape_cast %25 : vector<16xf32> to vector<16x1xf32>
    %27 = math.log %26 : vector<16x1xf32>
    %28 = arith.addf %21, %27 : vector<16x1xf32>
    %29 = arith.subf %28, %19 : vector<16x1xf32>
    %c0_9 = arith.constant 0 : index
    %c0_10 = arith.constant 0 : index
    %30 = vector.load %arg3[%c0_9, %c0_10] : memref<16x1xf32, #tpu.memory_space<vmem>>, vector<16x1xf32>
    tpu.vector_store %arg3[%c0_9, %c0_10], %29 {strides = array<i32>} : memref<16x1xf32, #tpu.memory_space<vmem>>, vector<16x1xf32>,
    return
  }
  func.func @transform_0(%arg0: i32) -> (i32, i32) {
    %c0_i32 = arith.constant 0 : i32
    %c0_i32_0 = arith.constant 0 : i32
    return %arg0, %c0_i32 : i32, i32
  }
  func.func @transform_1(%arg0: i32) -> (i32, i32) {
    %c0_i32 = arith.constant 0 : i32
    %c0_i32_0 = arith.constant 0 : i32
    return %arg0, %c0_i32 : i32, i32
  }
  func.func @transform_2(%arg0: i32) -> (i32, i32) {
    %c0_i32 = arith.constant 0 : i32
    %c0_i32_0 = arith.constant 0 : i32
    return %arg0, %c0_i32 : i32, i32
  }
}

</mosaic_0001>

<bundles_post_ra>
// kernel: tpu_custom_call.1
= control target key start
LH: loop header
LB: loop body
LE: loop exit
PB: predicated region body
PF: predicated region fallthrough
CT: control target
= control target key end

     0   :  { %s371_s9 = smov 0   ;;  %s402_s0 = inlined_call_operand.vmem [shape: f32[48,20], index: 0, kind: input, shape index: {}]   ;;  %s403_s1 = inlined_call_operand.vmem [shape: f32[48,1], index: 1, kind: input, shape index: {}]   ;;  %s404_s2 = inlined_call_operand.vmem [shape: f32[48,1], index: 2, kind: output, shape index: {}]  }
   0x1 LB: > { %s305_s10 = sadd.s32 4294967295, %s352_s9   ;;  %p309_p0 = scmp.ge.s32.totalorder %s352_s9, 1  ;;  %s352_s9 = sphi %s371_s9, %s12_s9  }
   0x2   : > { %p124_p1 = scmp.lt.s32.totalorder %s352_s9, 4 }
   0x4   : > { %p125_p2 = pnand %p309_p0, %p124_p1 }
   0x5   : > { %s310_s11 = sshll.u32 (!%p125_p2), %s305_s10, 1  ;;  %v354_v0 = vmov (!%p125_p2), 0   ;;  %vm201_vm0 = vcmask (!%p125_p2), 162816   ;;  %v185_v22 = vlaneseq (!%p125_p2)  ;;  %v355_v31 = vmov (!%p125_p2), 0.0  }
   0x6   : > { %128 = sbr.rel (%p125_p2) target bundleno = 340 (0x154), region = 28  ;;  %p152_p3 = scmp.lt.s32.totalorder (!%p125_p2), %s310_s11, 5  ;;  %336 = vset.pattern.permute.xlu1 (!%p125_p2), %v354_v0  ;;  %337 = vset.pattern.permute.xlu0 (!%p125_p2), %v354_v0  ;;  %vm234_vm3 = vcmask (!%p125_p2), 7168  }
   0x7   : > { %v186_v27 = vand.u32 (!%p125_p2), 127, %v185_v22 }
   0xd   : > { %s406_s11 = smov (!%p152_p3, %s310_s11), 5 }
   0xe   : > { %s379_s12 = sshll.u32 %s406_s11, 3 }
   0xf   : > { %s155_s15 = scalar_lea.vmem %s402_s0, %s379_s12  ;;  %s161_s18 = scalar_lea.vmem %s403_s1, %s379_s12 }
  0x10   : > { %v169_v1 = vld [vmem:[%s155_s15] sm:$0xff]  ;;  %v170_v2 = vld [vmem:[%s155_s15 + $0x8] sm:$0xff]  ;;  %s167_s21 = scalar_lea.vmem %s404_s2, %s379_s12 }
  0x11   : > { %v171_v3 = vld [vmem:[%s161_s18] sm:$0xff]  ;;  %v208_v4 = vsel %vm201_vm0, %v169_v1, -inf  ;;  %v172_v5 = vld [vmem:[%s161_s18 + $0x8] sm:$0xff]  ;;  %v211_v8 = vsel %vm201_vm0, %v170_v2, -inf }
  0x12   : > { %v316_v6 = vadd.f32 1.0, %v171_v3  ;;  %209 = vmax.xlane.f32.xlu0 %v208_v4  ;;  %v317_v7 = vadd.f32 1.0, %v172_v5 }
  0x14   : > { %v175_v9 = vmul.f32 10.0, %v316_v6  ;;  %v176_v10 = vmul.f32 10.0, %v317_v7 }
  0x16   : > { %v177_v11 = vfloor.f32 %v175_v9  ;;  %212 = vmax.xlane.f32.xlu0 %v211_v8  ;;  %v178_v12 = vfloor.f32 %v176_v10 }
  0x18   : > { %v179_v13 = vmax.f32 %v177_v11, 0.0  ;;  %v180_v14 = vmax.f32 %v178_v12, 0.0 }
  0x1a   : > { %v181_v15 = vmin.f32 %v179_v13, 19.0  ;;  %v182_v16 = vmin.f32 %v180_v14, 19.0 }
  0x1c   : > { %v322_v17 = vtrunc.f32 %v181_v15  ;;  %v324_v18 = vtrunc.f32 %v182_v16 }
  0x1e   : > { %v323_v19 = vcvt.f32.s32 %v322_v17  ;;  %v325_v20 = vcvt.f32.s32 %v324_v18 }
  0x20   : > { %188 = vperm.xlu1 %336, %v323_v19  }
  0x24   : > { %191 = vperm.xlu1 %336, %v325_v20  }
  0x9f   : > { %v210_v21 = vpop.xlane.xlu0 %209  ;;  %v189_v25 = vpop.permute.xlu1 %188 }
  0xa0   : > { %v214_v23 = vsub.f32 %v169_v1, %v210_v21  ;;  %vm193_vm1 = vcmp.eq.s32.totalorder %v186_v27, %v189_v25 }
  0xa1   : > { %v318_v32 = vsel %vm193_vm1, 1.0, %v355_v31 }
  0xa2   : > { %v216_v24 = vmul.f32 1.442695, %v214_v23  ;;  %v199_v33 = vmul.f32 %v318_v32, %v169_v1 }
  0xa3   : > { %v213_v26 = vpop.xlane.xlu0 %212  ;;  %v192_v30 = vpop.permute.xlu1 %191 }
  0xa4   : > { %338 = vpow2.f32 %v216_v24  ;;  %v215_v28 = vsub.f32 %v170_v2, %v213_v26  ;;  %vm194_vm2 = vcmp.eq.s32.totalorder %v186_v27, %v192_v30  ;;  %v202_v37 = vsel %vm201_vm0, %v199_v33, 0.0 }
  0xa5   : > { %v319_v35 = vsel %vm194_vm2, 1.0, %v355_v31 }
  0xa6   : > { %v218_v29 = vmul.f32 1.442695, %v215_v28  ;;  %v200_v38 = vmul.f32 %v319_v35, %v170_v2 }
  0xa8   : > { %340 = vpow2.f32 %v218_v29  ;;  %v205_v41 = vsel %vm201_vm0, %v200_v38, 0.0 }
  0xae   : > { %v339_v34 = vpop.eup %338 }
  0xaf   : > { %v220_v36 = vsel %vm201_vm0, %v339_v34, 0.0 }
  0xb0   : > { %221 = vadd.xlane.f32.xlu0 %v220_v36 }
  0xb2   : > { %v341_v39 = vpop.eup %340 }
  0xb3   : > { %v223_v40 = vsel %vm201_vm0, %v341_v39, 0.0 }
  0xb4   : > { %224 = vadd.xlane.f32.xlu1 %v223_v40  ;;  %203 = vadd.xlane.f32.xlu0 %v202_v37 }
  0xb8   : > { %206 = vadd.xlane.f32.xlu0 %v205_v41 }
 0x13d   : > { %v222_v42 = vpop.xlane.xlu0 %221 }
 0x13e   : > { %342 = vlog2.f32 %v222_v42 }
 0x141   : > { %v225_v43 = vpop.xlane.xlu1 %224  ;;  %v204_v46 = vpop.xlane.xlu0 %203 }
 0x142   : > { %344 = vlog2.f32 %v225_v43 }
 0x145   : > { %v207_v52 = vpop.xlane.xlu0 %206 }
 0x148   : > { %v343_v44 = vpop.eup %342 }
 0x149   : > { %v227_v45 = vmul.f32 0.6931472, %v343_v44 }
 0x14b   : > { %v230_v47 = vadd.f32 %v227_v45, %v210_v21 }
 0x14c   : > { %v345_v48 = vpop.eup %344 }
 0x14d   : > { %v229_v49 = vmul.f32 0.6931472, %v345_v48  ;;  %v232_v50 = vsub.f32 %v230_v47, %v204_v46 }
 0x14f   : > { %235 = vst.msk [vmem:[%s167_s21] sm:$0xff] %vm234_vm3, %v232_v50  ;;  %v231_v51 = vadd.f32 %v229_v49, %v213_v26 }
 0x151   : > { %v233_v53 = vsub.f32 %v231_v51, %v207_v52 }
 0x153   : > { %236 = vst.msk [vmem:[%s167_s21 + $0x8] sm:$0xff] %vm234_vm3, %v233_v53 }
 0x154 PF: > { %s12_s9 = sadd.s32 1, %s352_s9  }
 0x155   : > { %p9_p4 = scmp.ge.s32.totalorder %s12_s9, 5  }
 0x157   :  { %11 = sbr.rel (!%p9_p4) target bundleno = 1 (0x1), region = 61 }

</bundles_post_ra>
